<compile_context>
chip_gen: v7x
topology: tpu7x:2x2x1
jax: 0.10.0
libtpu: 0.0.40
codegen_flags: <defaults>
</compile_context>

<pallas_src>
import jax
import jax.numpy as jnp
from jax.experimental import pallas as pl
from jax.experimental.pallas import tpu as pltpu

EPS = 1e-10
_MIB = 1024 * 1024


def _l2norm_kernel(w_ref, x_ref, o_ref):
    # w_ref: (1, C, 1) float32 per-channel scale (constant index_map -> VMEM resident)
    # x_ref: (Nb, C, T) input tile; reduction is over the channel axis (axis=1)
    x = x_ref[...].astype(jnp.float32)
    # matches torch: sqrt(sum(x^2, dim=1, keepdim=True)) + eps  (eps added AFTER sqrt)
    norm = jnp.sqrt(jnp.sum(x * x, axis=1, keepdims=True)) + EPS      # (Nb, 1, T)
    inv = pl.reciprocal(norm, approx=False)                            # EUP slot, exact
    o_ref[...] = ((x * inv) * w_ref[...]).astype(o_ref.dtype)


def _tpu_vmem_capacity_bytes():
    try:
        return int(pltpu.get_tpu_info().vmem_capacity_bytes)
    except Exception:
        return 64 * _MIB  # conservative (v7x-sized) fallback


def _is_multi_tensorcore():
    # v7x (and v4/v5p megacore) expose 2 TensorCores to one pallas_call; grid axes
    # marked "parallel" are sharded across them, so we want >= 4 balanced steps.
    try:
        kind = jax.devices()[0].device_kind.lower()
    except Exception:
        return False
    return ("v7" in kind) or ("v4" in kind) or ("v5p" in kind)


def _round_up(x, m):
    return ((x + m - 1) // m) * m


def l2_normalisation(x_nchw, weight):
    """x_nchw: (N, C, H, W); weight: (C,). Returns (N, C, H, W)."""
    N, C, H, W = x_nchw.shape
    HW = H * W
    itemsize = jnp.dtype(x_nchw.dtype).itemsize

    x_flat = x_nchw.reshape(N, C, HW)
    # Keep the weight in float32 (no precision loss for bf16 inputs); it is tiny.
    w3 = weight.reshape(1, C, 1).astype(jnp.float32)

    # ---- generation-aware VMEM budgeting ----
    vmem = _tpu_vmem_capacity_bytes()          # 128 MiB on v5e/v6e, 64 MiB on v7x
    vmem_limit = (3 * vmem) // 4               # scoped-VMEM limit with headroom
    budget = (4 * vmem_limit) // 5             # what our block estimate may consume

    # Per-element VMEM cost: in+out double-buffered (2*2*itemsize) plus the f32
    # temporaries the kernel keeps live between the norm pass and the scale pass.
    per_elem = 4 * itemsize + 8
    per_sample_vmem = C * HW * per_elem
    per_sample_read = C * HW * itemsize

    multi_tc = _is_multi_tensorcore()
    MIN_STEPS = 4            # keep both TensorCores busy + enough pipeline depth
    SPLIT_FLOOR = 1 * _MIB   # don't shrink blocks below this just for step count

    if per_sample_vmem <= budget:
        # ---- Path A: full-HW (pad-free, lane-dense) blocks, batch rows folded in.
        # Biggest block that fits the VMEM budget; no artificial per-step cap.
        nb = min(N, max(1, budget // per_sample_vmem))
        t = HW
        if multi_tc and N * per_sample_read >= 2 * _MIB:
            if pl.cdiv(N, nb) < MIN_STEPS:
                # shrink nb toward ceil(N/MIN_STEPS) but keep blocks >= SPLIT_FLOOR
                nb_target = max(1, pl.cdiv(N, MIN_STEPS))
                nb_floor = max(1, pl.cdiv(SPLIT_FLOOR, per_sample_read))
                nb = min(nb, max(nb_target, nb_floor))
            steps_b = pl.cdiv(N, nb)
            if steps_b < MIN_STEPS:
                # not enough batch rows: add a spatial grid axis (even total steps)
                n_sp = pl.cdiv(MIN_STEPS, steps_b)
                t_new = max(128, _round_up(pl.cdiv(HW, n_sp), 128))
                if t_new < HW:
                    t = t_new
    else:
        # ---- Path B: very large C*HW — tile the spatial (lane) axis, no padding.
        nb = 1
        t = (budget // (C * per_elem)) // 128 * 128
        t = max(128, t)
        if t >= HW:
            t = HW
        # TODO(synk): if C alone is so large that a single 128-lane block exceeds the
        # scoped VMEM limit, the channel reduction itself would need to be split
        # across grid steps with an accumulator; not needed for SSD-sized C.

    grid = (pl.cdiv(N, nb), pl.cdiv(HW, t))

    out_flat = pl.pallas_call(
        _l2norm_kernel,
        out_shape=jax.ShapeDtypeStruct((N, C, HW), x_nchw.dtype),
        grid_spec=pltpu.PrefetchScalarGridSpec(
            num_scalar_prefetch=0,
            grid=grid,
            in_specs=[
                pl.BlockSpec((1, C, 1), lambda n, s: (0, 0, 0)),   # weight, resident
                pl.BlockSpec((nb, C, t), lambda n, s: (n, 0, s)),  # x block
            ],
            out_specs=pl.BlockSpec((nb, C, t), lambda n, s: (n, 0, s)),
        ),
        compiler_params=pltpu.CompilerParams(
            dimension_semantics=("parallel", "parallel"),
            vmem_limit_bytes=vmem_limit,
        ),
    )(w3, x_flat)
    return out_flat.reshape(N, C, H, W)


def reference(x, weight):
    norm = jnp.sqrt(jnp.sum(x * x, axis=1, keepdims=True)) + EPS
    return weight[None, :, None, None] * (x / norm)


if __name__ == "__main__":
    key = jax.random.PRNGKey(0)
    N, C, H, W = 2, 4, 16, 16
    scale = 20.0  # matches SSD's L2Norm gamma init (init.constant_)

    x = jax.random.normal(key, (N, C, H, W), dtype=jnp.float32)
    weight = jnp.full((C,), scale, dtype=jnp.float32)

    out = l2_normalisation(x, weight)
    out = jax.block_until_ready(out)

    ref = reference(x, weight)
    assert out.shape == (N, C, H, W)
    assert jnp.allclose(out, ref, atol=1e-5, rtol=1e-5), "mismatch vs reference"

    print("KERNEL_OK")
</pallas_src>

<mosaic_0001>
module attributes {stable_mosaic.version = 11 : i64} {
  func.func @_l2norm_kernel(%arg0: i32, %arg1: i32, %arg2: memref<1x4x1xf32, #tpu.memory_space<vmem>>, %arg3: memref<2x4x256xf32, #tpu.memory_space<vmem>>, %arg4: memref<2x4x256xf32, #tpu.memory_space<vmem>>) attributes {dimension_semantics = [#tpu.dimension_semantics<parallel>, #tpu.dimension_semantics<parallel>], iteration_bounds = array<i64: 1, 1>, scalar_prefetch = 0 : i64, scratch_operands = 0 : i64, tpu.core_type = #tpu.core_type<tc>, window_params = [{pipeline_mode = #tpu.pipeline_mode<synchronous>, transform_indices = @transform_0, window_bounds = array<i64: 1, 4, 1>}, {transform_indices = @transform_1, window_bounds = array<i64: 2, 4, 256>}, {transform_indices = @transform_2, window_bounds = array<i64: 2, 4, 256>}]} {
    %c0 = arith.constant 0 : index
    %c0_0 = arith.constant 0 : index
    %c0_1 = arith.constant 0 : index
    %0 = vector.load %arg3[%c0, %c0_0, %c0_1] : memref<2x4x256xf32, #tpu.memory_space<vmem>>, vector<2x4x256xf32>
    %1 = arith.mulf %0, %0 : vector<2x4x256xf32>
    %cst = arith.constant dense<0.000000e+00> : vector<2x256xf32>
    %2 = vector.multi_reduction <add>, %1, %cst [1] : vector<2x4x256xf32> to vector<2x256xf32>
    %3 = vector.shape_cast %2 : vector<2x256xf32> to vector<2x1x256xf32>
    %4 = math.sqrt %3 : vector<2x1x256xf32>
    %cst_2 = arith.constant 1.000000e-10 : f32
    %5 = vector.broadcast %cst_2 : f32 to vector<2x1x256xf32>
    %6 = arith.addf %4, %5 : vector<2x1x256xf32>
    %7 = tpu.reciprocal %6 : vector<2x1x256xf32> -> vector<2x1x256xf32>
    %8 = vector.broadcast %7 : vector<2x1x256xf32> to vector<2x4x256xf32>
    %9 = arith.mulf %0, %8 : vector<2x4x256xf32>
    %c0_3 = arith.constant 0 : index
    %c0_4 = arith.constant 0 : index
    %c0_5 = arith.constant 0 : index
    %10 = vector.load %arg2[%c0_3, %c0_4, %c0_5] : memref<1x4x1xf32, #tpu.memory_space<vmem>>, vector<1x4x1xf32>
    %11 = vector.broadcast %10 : vector<1x4x1xf32> to vector<2x4x256xf32>
    %12 = arith.mulf %9, %11 : vector<2x4x256xf32>
    %c0_6 = arith.constant 0 : index
    %c0_7 = arith.constant 0 : index
    %c0_8 = arith.constant 0 : index
    %13 = vector.load %arg4[%c0_6, %c0_7, %c0_8] : memref<2x4x256xf32, #tpu.memory_space<vmem>>, vector<2x4x256xf32>
    tpu.vector_store %arg4[%c0_6, %c0_7, %c0_8], %12 {strides = array<i32>} : memref<2x4x256xf32, #tpu.memory_space<vmem>>, vector<2x4x256xf32>,
    return
  }
  func.func @transform_0(%arg0: i32, %arg1: i32) -> (i32, i32, i32) {
    %c0_i32 = arith.constant 0 : i32
    %c0_i32_0 = arith.constant 0 : i32
    %c0_i32_1 = arith.constant 0 : i32
    %c0_i32_2 = arith.constant 0 : i32
    return %c0_i32, %c0_i32_0, %c0_i32_1 : i32, i32, i32
  }
  func.func @transform_1(%arg0: i32, %arg1: i32) -> (i32, i32, i32) {
    %c0_i32 = arith.constant 0 : i32
    %c0_i32_0 = arith.constant 0 : i32
    return %arg0, %c0_i32, %arg1 : i32, i32, i32
  }
  func.func @transform_2(%arg0: i32, %arg1: i32) -> (i32, i32, i32) {
    %c0_i32 = arith.constant 0 : i32
    %c0_i32_0 = arith.constant 0 : i32
    return %arg0, %c0_i32, %arg1 : i32, i32, i32
  }
}

</mosaic_0001>

<bundles_post_ra>
// kernel: tpu_custom_call.1
= control target key start
LH: loop header
LB: loop body
LE: loop exit
PB: predicated region body
PF: predicated region fallthrough
CT: control target
= control target key end

     0   :  { %7 = vsyncpa [#allocation3], 0  ;;  %s280_s0 = inlined_call_operand.vmem [shape: f32[1,4,1], index: 0, kind: input, shape index: {}]   ;;  %s281_s1 = inlined_call_operand.hbm [shape: f32[2,4,256], index: 1, kind: input, shape index: {}]   ;;  %s282_s2 = inlined_call_operand.hbm [shape: f32[2,4,256], index: 2, kind: output, shape index: {}]  }
   0x1   :  { %8 = vsyncpa [#allocation4], 0  ;;  %s216_s9 = smov [#allocation2]   ;;  %s168_s13 = scalar_lea.hbm %s281_s1, 256 }
   0x2   :  { %s16_s10 = sshll.u32 %s216_s9, 4  ;;  %p169_p0 = scmp.ne.s32.totalorder %s281_s1, %s168_s13  ;;  %s17_s10 = int_to_ptr.vmem [resolvable:$true] %s16_s10 }
   0x3   :  { %p172_p1 = scmp.lt.u32.totalorder %s168_s13, %s281_s1 }
   0x5   :  { %p174_p2 = pnand %p172_p1, %p169_p0 }
   0x7   :  { %177 = shalt.err (!%p174_p2)
}
   0x8   :  { %s178_s18 = scalar_lea.vmem %s17_s10, 256  ;;  %p183_p4 = scmp.lt.s32.totalorder %s17_s10, %s17_s10 }
   0x9   :  { %p179_p3 = scmp.ne.s32.totalorder %s17_s10, %s178_s18  ;;  %p184_p5 = scmp.lt.s32.totalorder %s178_s18, %s178_s18 }
   0xb   :  { %p185_p6 = por %p184_p5, %p183_p4 }
   0xd   :  { %p186_p7 = pnand %p185_p6, %p179_p3 }
   0xf   :  { %189 = shalt.err (!%p186_p7)
}
  0x10   :  { %s217_s19 = smov 128   ;;  %s218_s20 = smov 8  }
  0x11   :  { %22 = dma.hbm_to_vmem [thread:$0]  %s281_s1, 256, %s17_s10, [#allocation3], %s217_s19, %s217_s19, %s218_s20  }
  0x12   :  { %212 = dma.done.wait [#allocation3], 256  }
  0x13   :  { %213 = vsyncadd [#allocation3], 4294967040  ;;  %v219_v0 = vmov 0   ;;  %v111_v1 = vld [vmem:[%s280_s0] sm:$0xf]  ;;  %v257_v3 = vld [vmem:[#allocation2 + $0x8] sm:$0xff]  ;;  %v119_v63 = vlaneseq }
  0x14   :  { %151 = vset.pattern.permute.xlu0 %v219_v0  ;;  %v255_v2 = vld [vmem:[#allocation2] sm:$0xff]  ;;  %v29_v5 = vmul.f32 %v257_v3, %v257_v3  ;;  %vm36_vm0 = vcmask 1043456   ;;  %v220_v61 = vmov 839922192   ;;  %s221_s0 = smov [#allocation5]  }
  0x15   :  { %114 = vperm.xlu0 %151, %v111_v1   ;;  %v28_v4 = vmul.f32 %v255_v2, %v255_v2  ;;  %v117_v62 = vunpack.c.l.s4 %v220_v61  ;;  %s133_s1 = sshll.u32 %s221_s0, 4  ;;  %s134_s1 = int_to_ptr.vmem [resolvable:$true] %s133_s1 }
  0x16   :  { %v33_v7 = vcombine.high %v29_v5, %v29_v5  ;;  %v51_v9 = vsel %vm36_vm0, %v29_v5, 0.0  ;;  %s190_s25 = scalar_lea.vmem %s134_s1, 256  ;;  %p195_p9 = scmp.lt.s32.totalorder %s134_s1, %s134_s1 }
  0x17   :  { %v32_v6 = vcombine.high %v28_v4, %v28_v4  ;;  %v37_v8 = vsel %vm36_vm0, %v28_v4, 0.0  ;;  %v52_v13 = vrot.slane %v51_v9, 4  ;;  %v118_v5 = vunpack.c.0.s8 %v117_v62  ;;  %p191_p8 = scmp.ne.s32.totalorder %s134_s1, %s190_s25  ;;  %p196_p10 = scmp.lt.s32.totalorder %s190_s25, %s190_s25 }
  0x18   :  { %v38_v11 = vrot.slane %v37_v8, 4  ;;  %v58_v12 = vsel %vm36_vm0, %v33_v7, 0.0 }
  0x19   :  { %v44_v10 = vsel %vm36_vm0, %v32_v6, 0.0  ;;  %v59_v15 = vrot.slane %v58_v12, 4  ;;  %v53_v17 = vadd.f32 %v52_v13, %v51_v9  ;;  %v120_v6 = vshrl.u32 %v119_v63, 7  ;;  %p197_p11 = por %p196_p10, %p195_p9 }
  0x1a   :  { %v45_v14 = vrot.slane %v44_v10, 4  ;;  %v39_v16 = vadd.f32 %v38_v11, %v37_v8 }
  0x1b   :  { %v60_v19 = vadd.f32 %v59_v15, %v58_v12  ;;  %v54_v21 = vrot.slane %v53_v17, 2  ;;  %v121_v9 = vsub.s32 %v118_v5, %v120_v6  ;;  %p198_p12 = pnand %p197_p11, %p191_p8 }
  0x1c   :  { %v46_v18 = vadd.f32 %v45_v14, %v44_v10  ;;  %v40_v20 = vrot.slane %v39_v16, 2 }
  0x1d   :  { %v61_v23 = vrot.slane %v60_v19, 2  ;;  %v55_v25 = vadd.f32 %v54_v21, %v53_v17 }
  0x1e   :  { %v47_v22 = vrot.slane %v46_v18, 2  ;;  %v41_v24 = vadd.f32 %v40_v20, %v39_v16 }
  0x1f   :  { %v62_v27 = vadd.f32 %v61_v23, %v60_v19  ;;  %v56_v29 = vrot.slane %v55_v25, 1 }
  0x20   :  { %v48_v26 = vadd.f32 %v47_v22, %v46_v18  ;;  %v42_v28 = vrot.slane %v41_v24, 1 }
  0x21   :  { %v63_v31 = vrot.slane %v62_v27, 1  ;;  %v57_v33 = vadd.f32 %v56_v29, %v55_v25 }
  0x22   :  { %v49_v30 = vrot.slane %v48_v26, 1  ;;  %v43_v32 = vadd.f32 %v42_v28, %v41_v24 }
  0x23   :  { %v64_v35 = vadd.f32 %v63_v31, %v62_v27  ;;  %vm81_vm2 = vcmp.eq.f32.partialorder %v57_v33, inf  ;;  %v84_v46 = vand.u32 2147483648, %v57_v33  ;;  %vm83_vm6 = vcmp.eq.f32.partialorder %v57_v33, 0.0 }
  0x24   :  { %v50_v34 = vadd.f32 %v49_v30, %v48_v26  ;;  %152 = vrsqrt.f32 %v43_v32  ;;  %vm67_vm1 = vcmp.eq.f32.partialorder %v43_v32, inf  ;;  %v70_v43 = vand.u32 2147483648, %v43_v32 }
  0x25   :  { %154 = vrsqrt.f32 %v57_v33  ;;  %vm69_vm4 = vcmp.eq.f32.partialorder %v43_v32, 0.0  ;;  %vm88_vm5 = vcmp.eq.f32.partialorder %v64_v35, inf  ;;  %v91_v50 = vand.u32 2147483648, %v64_v35 }
  0x26   :  { %156 = vrsqrt.f32 %v50_v34  ;;  %vm74_vm3 = vcmp.eq.f32.partialorder %v50_v34, inf  ;;  %v77_v47 = vand.u32 2147483648, %v50_v34  ;;  %vm76_vm7 = vcmp.eq.f32.partialorder %v50_v34, 0.0 }
  0x27   :  { %158 = vrsqrt.f32 %v64_v35  ;;  %vm90_vm8 = vcmp.eq.f32.partialorder %v64_v35, 0.0 }
  0x2e   :  { %v153_v36 = vpop.eup %152 }
  0x2f   :  { %v155_v37 = vpop.eup %154  ;;  %v66_v40 = vmul.f32 %v153_v36, %v43_v32 }
  0x30   :  { %v157_v38 = vpop.eup %156  ;;  %v80_v41 = vmul.f32 %v155_v37, %v57_v33 }
  0x31   :  { %v159_v39 = vpop.eup %158  ;;  %v73_v42 = vmul.f32 %v157_v38, %v50_v34  ;;  %v68_v45 = vsel %vm67_vm1, %v43_v32, %v66_v40 }
  0x32   :  { %v87_v44 = vmul.f32 %v159_v39, %v64_v35  ;;  %v82_v48 = vsel %vm81_vm2, %v57_v33, %v80_v41  ;;  %v71_v51 = vsel %vm69_vm4, %v70_v43, %v68_v45 }
  0x33   :  { %v75_v49 = vsel %vm74_vm3, %v50_v34, %v73_v42  ;;  %v85_v53 = vsel %vm83_vm6, %v84_v46, %v82_v48  ;;  %v93_v56 = vadd.f32 1e-10, %v71_v51 }
  0x34   :  { %v89_v52 = vsel %vm88_vm5, %v64_v35, %v87_v44  ;;  %v78_v54 = vsel %vm76_vm7, %v77_v47, %v75_v49  ;;  %v95_v57 = vadd.f32 1e-10, %v85_v53 }
  0x35   :  { %v92_v55 = vsel %vm90_vm8, %v91_v50, %v89_v52  ;;  %v94_v58 = vadd.f32 1e-10, %v78_v54  ;;  %160 = vrcp.f32 %v93_v56 }
  0x36   :  { %v96_v59 = vadd.f32 1e-10, %v92_v55  ;;  %162 = vrcp.f32 %v95_v57 }
  0x37   :  { %164 = vrcp.f32 %v94_v58 }
  0x38   :  { %166 = vrcp.f32 %v96_v59 }
  0x3f   :  { %v161_v60 = vpop.eup %160 }
  0x40   :  { %v163_v0 = vpop.eup %162 }
  0x41   :  { %v165_v1 = vpop.eup %164 }
  0x42   :  { %v167_v4 = vpop.eup %166  ;;  %v105_v7 = vcombine.low %v161_v60, %v165_v1 }
  0x43   :  { %v106_v8 = vcombine.low %v163_v0, %v167_v4 }
  0x44   :  { %v109_v10 = vmul.f32 %v105_v7, %v255_v2 }
  0x45   :  { %v110_v11 = vmul.f32 %v106_v8, %v257_v3 }
  0x94   :  { %v115_v12 = vpop.permute.xlu0 %114 }
  0x95   :  { %v122_v13 = vrot.slane %v115_v12, %v121_v9 }
  0x97   :  { %v124_v14 = vmul.f32 %v122_v13, %v109_v10  ;;  %v125_v15 = vmul.f32 %v122_v13, %v110_v11 }
  0x99   :  { %126 = vst [vmem:[#allocation5] sm:$0xff] %v124_v14  ;;  %127 = vst [vmem:[#allocation5 + $0x8] sm:$0xff] %v125_v15 }
  0x9a   :  { %201 = shalt.err (!%p198_p12)
}
  0x9b   :  { %s202_s28 = scalar_lea.hbm %s282_s2, 256 }
  0x9c   :  { %p203_p13 = scmp.ne.s32.totalorder %s282_s2, %s202_s28  ;;  %p206_p0 = scmp.lt.u32.totalorder %s202_s28, %s282_s2 }
  0x9e   :  { %p208_p1 = pnand %p206_p0, %p203_p13 }
  0xa0   :  { %211 = shalt.err (!%p208_p1)
}
  0xa1   :  { %139 = dma.vmem_to_hbm [thread:$0]  %s134_s1, 256, %s282_s2, [#allocation4], %s217_s19, %s217_s19, %s218_s20  }
  0xa2   :  { %214 = dma.done.wait [#allocation4], 256  }
  0xa3   :  { %215 = vsyncadd [#allocation4], 4294967040 }
  0xa4   :  { %143 = vsyncpa [#allocation3], 1 }
  0xa5   :  { %144 = vsyncpa [#allocation4], 1 }

</bundles_post_ra>
